<compile_context>
chip_gen: v5e
topology: v5e:2x2
jax: 0.10.0
libtpu: 0.0.40
codegen_flags: <defaults>
</compile_context>

<pallas_src>
import functools
import numpy as np
import jax
import jax.numpy as jnp
from jax import lax
from jax.experimental import pallas as pl
from jax.experimental.pallas import tpu as pltpu


# ----------------------------------------------------------------------------
# Pallas kernel: ROI_TILE ROIs per grid step, everything expressed as matmuls.
# ----------------------------------------------------------------------------
def _mask_head_kernel(x_ref,
                      w1_ref, b1_ref, w2_ref, b2_ref, w3_ref, b3_ref,
                      w4_ref, b4_ref, wd_ref, bd_ref, wp_ref, bp_ref,
                      out_ref, *, hp):
    # x_ref  : (T*Hp, Wp*Cin)        bf16  T ROIs stacked on sublanes (M dim)
    # wN_ref : (3, Wp*Cin_l, Wp*D)   bf16  per-dy banded 3x3 conv weight
    # bN_ref : (1, Wp*D)             f32
    # wd_ref : (Wp*D, 4*Wp*D)        bf16  4 (ky,kx) deconv taps fused on lanes
    # bd_ref : (1, 4*Wp*D)           f32
    # wp_ref : (4*Wp*D, LANE_PAD)    bf16  block-diag 1x1 predictor (+zero pad)
    # bp_ref : (1, LANE_PAD)         f32
    # out_ref: (T*Hp, LANE_PAD)      bf16  lane-dense logits block
    f32, bf16 = jnp.float32, jnp.bfloat16
    h = x_ref[...].astype(f32)                   # bf16 DMA, f32 in-kernel math
    nrows = h.shape[0]

    # Per-ROI H boundary masks, hoisted: computed once, reused by all 4 convs.
    rid = lax.broadcasted_iota(jnp.int32, (nrows, 1), 0) % hp
    top = rid == 0
    bot = rid == hp - 1

    def conv3x3(h, w_ref, b_ref):
        # SAME zero padding along H: sublane roll (XLU) + boundary mask (VPU);
        # pltpu.roll needs non-negative shifts, so the "up" tap uses nrows-1.
        down = jnp.where(top, 0.0, pltpu.roll(h, shift=1, axis=0))         # h[y-1]
        up = jnp.where(bot, 0.0, pltpu.roll(h, shift=nrows - 1, axis=0))   # h[y+1]
        # Three accumulating MXU dots (one per dy tap) -- no lane concat.
        acc = jnp.dot(down.astype(bf16), w_ref[0], preferred_element_type=f32)
        acc += jnp.dot(h.astype(bf16), w_ref[1], preferred_element_type=f32)
        acc += jnp.dot(up.astype(bf16), w_ref[2], preferred_element_type=f32)
        return jax.nn.relu(acc + b_ref[...])

    h = conv3x3(h, w1_ref, b1_ref)
    h = conv3x3(h, w2_ref, b2_ref)
    h = conv3x3(h, w3_ref, b3_ref)
    h = conv3x3(h, w4_ref, b4_ref)

    # ConvTranspose2d(k=2,s=2)+ReLU and the 1x1 classifier, each as one matmul
    # with all four (ky,kx) sub-grids fused on the lane axis.
    y = jax.nn.relu(jnp.dot(h.astype(bf16), wd_ref[...],
                            preferred_element_type=f32) + bd_ref[...])
    logits = jnp.dot(y.astype(bf16), wp_ref[...],
                     preferred_element_type=f32) + bp_ref[...]
    out_ref[...] = logits.astype(out_ref.dtype)   # bf16 lane-dense writeback


# ----------------------------------------------------------------------------
# Parameter setup / layout glue (plain JAX)
# ----------------------------------------------------------------------------
def init_params(key, cin, dim, num_classes):
    ks = jax.random.split(key, 12)
    w = lambda k, shape, s: s * jax.random.normal(k, shape, jnp.float32)
    return {
        # conv weights are (kh, kw, Cin, Cout); biases (Cout,)
        "convs": [
            (w(ks[0], (3, 3, cin, dim), 0.3), w(ks[1], (dim,), 0.1)),
            (w(ks[2], (3, 3, dim, dim), 0.2), w(ks[3], (dim,), 0.1)),
            (w(ks[4], (3, 3, dim, dim), 0.2), w(ks[5], (dim,), 0.1)),
            (w(ks[6], (3, 3, dim, dim), 0.2), w(ks[7], (dim,), 0.1)),
        ],
        # ConvTranspose2d weight stored as (kh, kw, Cin, Cout)
        "deconv": (w(ks[8], (2, 2, dim, dim), 0.2), w(ks[9], (dim,), 0.1)),
        # 1x1 conv: (Cin, num_classes)
        "pred": (w(ks[10], (dim, num_classes), 0.2),
                 w(ks[11], (num_classes,), 0.1)),
    }


# TODO(synk): the kron/banded weight expansion only makes sense for small
# D*Wp (demo regime).  At production Mask R-CNN sizes (Cin=D=256, Wp=14) switch
# to C-on-lanes with 9 accumulating taps against dense (Cin, D) weights.
def _stacked_conv_weight(w3, wp_size):
    # (3,3,Cin,Cout) -> (3, wp*Cin, wp*Cout); dy blocks ordered 0,1,2 to match
    # the [h[y-1], h[y], h[y+1]] taps in the kernel.
    mats = []
    for dy in range(3):
        m = jnp.zeros((wp_size * w3.shape[2], wp_size * w3.shape[3]),
                      jnp.float32)
        for dx in range(3):
            e = jnp.asarray(np.eye(wp_size, k=1 - dx), jnp.float32)
            m = m + jnp.kron(e, w3[dy, dx])
        mats.append(m)
    return jnp.stack(mats, axis=0)


def _block_diag(w2, n):
    return jnp.kron(jnp.asarray(np.eye(n), jnp.float32), w2)


def _tiled_bias(b, n):
    return jnp.tile(b, n)[None, :]


# TODO(synk): ROIAlign (data-dependent bilinear gather over proposal boxes) is
# done in plain-JAX glue; a scalar-prefetch + manual-DMA Pallas gather would be
# needed for it not to dominate at realistic proposal counts.
def roi_align(feat_nhwc, boxes, box_batch, out_size):
    n, hf, wf, c = feat_nhwc.shape

    def one(box, bi):
        x1, y1, x2, y2 = box[0], box[1], box[2], box[3]
        ys = y1 + (jnp.arange(out_size, dtype=jnp.float32) + 0.5) * (y2 - y1) / out_size
        xs = x1 + (jnp.arange(out_size, dtype=jnp.float32) + 0.5) * (x2 - x1) / out_size
        y0 = jnp.clip(jnp.floor(ys), 0, hf - 1)
        x0 = jnp.clip(jnp.floor(xs), 0, wf - 1)
        y0i = y0.astype(jnp.int32)
        x0i = x0.astype(jnp.int32)
        y1i = jnp.clip(y0i + 1, 0, hf - 1)
        x1i = jnp.clip(x0i + 1, 0, wf - 1)
        wy = jnp.clip(ys - y0, 0.0, 1.0)[:, None, None]
        wx = jnp.clip(xs - x0, 0.0, 1.0)[None, :, None]
        img = feat_nhwc[bi]
        g = lambda yy, xx: img[yy][:, xx, :]
        top = g(y0i, x0i) * (1 - wx) + g(y0i, x1i) * wx
        bot = g(y1i, x0i) * (1 - wx) + g(y1i, x1i) * wx
        return top * (1 - wy) + bot * wy

    return jax.vmap(one)(boxes, box_batch)


def _pick_roi_tile():
    # Base ROI tile per generation: bigger blocks = fewer grid steps
    # (~0.35us/step amortized).  v5e gains nothing from M>128 per MXU pass but
    # still benefits from large blocks; v6e/v7x default larger.
    try:
        kind = jax.devices()[0].device_kind.lower()
    except Exception:
        return 32
    for old in ("v2", "v3", "v4", "v5"):
        if old in kind:
            return 32
    return 64


# ----------------------------------------------------------------------------
# Wrapper: ROIAlign glue + pallas_call over ROI tiles
# ----------------------------------------------------------------------------
def mask_head_forward(features_nchw, boxes, box_batch, params,
                      pooled_size=8, num_classes=2, roi_tile=None):
    feat = jnp.transpose(features_nchw, (0, 2, 3, 1))           # NCHW -> NHWC
    pooled = roi_align(feat, boxes, box_batch, pooled_size)     # (R,Hp,Wp,Cin)
    r, hp, wp, cin = pooled.shape
    nc = num_classes

    if roi_tile is None:
        roi_tile = _pick_roi_tile()
        roi_tile = max(1, min(roi_tile, r))        # don't over-pad tiny batches
        if r >= 2 and pl.cdiv(r, roi_tile) < 2:    # >=2 tiles: both v7x cores work
            roi_tile = pl.cdiv(r, 2)
    while (roi_tile * hp) % 8:                     # sublane-aligned row block
        roi_tile += 1
    n_tiles = pl.cdiv(r, roi_tile)
    r_pad = n_tiles * roi_tile
    if r_pad != r:
        pooled = jnp.pad(pooled, ((0, r_pad - r), (0, 0), (0, 0), (0, 0)))

    # ROI axis rides on sublanes; bf16 input halves per-tile HBM DMA bytes.
    x_flat = pooled.reshape(r_pad * hp, wp * cin).astype(jnp.bfloat16)

    bf16 = jnp.bfloat16
    conv_w = [_stacked_conv_weight(wl, wp).astype(bf16)
              for (wl, _) in params["convs"]]
    conv_b = [_tiled_bias(bl, wp) for (_, bl) in params["convs"]]

    wd, bd = params["deconv"]
    wd_cat = jnp.concatenate(
        [_block_diag(wd[ky, kx], wp) for ky in range(2) for kx in range(2)],
        axis=1).astype(bf16)                                    # (Wp*D, 4*Wp*D)
    bd_cat = _tiled_bias(bd, 4 * wp)

    wpred, bpred = params["pred"]
    lane_w = 4 * wp * nc
    lane_pad = max(128, -(-lane_w // 128) * 128)   # >=128 and multiple of 128
    wp_cat = _block_diag(wpred, 4 * wp).astype(bf16)            # (4*Wp*D, lane_w)
    bp_cat = _tiled_bias(bpred, 4 * wp)
    if lane_pad != lane_w:                         # lane-dense, unmasked stores
        wp_cat = jnp.pad(wp_cat, ((0, 0), (0, lane_pad - lane_w)))
        bp_cat = jnp.pad(bp_cat, ((0, 0), (0, lane_pad - lane_w)))

    def full_spec(arr):
        nd = arr.ndim
        return pl.BlockSpec(arr.shape, lambda i, nd=nd: (0,) * nd)

    block_rows = roi_tile * hp
    weights = []
    for w_, b_ in zip(conv_w, conv_b):
        weights += [w_, b_]
    weights += [wd_cat, bd_cat, wp_cat, bp_cat]

    # TODO(synk): at production D the grid-invariant weight operands should be
    # single-buffered (pipeline_mode) to halve resident weight VMEM on v7x.
    in_specs = [pl.BlockSpec((block_rows, wp * cin), lambda i: (i, 0))]
    in_specs += [full_spec(a) for a in weights]
    out_spec = pl.BlockSpec((block_rows, lane_pad), lambda i: (i, 0))

    out = pl.pallas_call(
        functools.partial(_mask_head_kernel, hp=hp),
        out_shape=jax.ShapeDtypeStruct((r_pad * hp, lane_pad), jnp.bfloat16),
        grid_spec=pltpu.PrefetchScalarGridSpec(
            num_scalar_prefetch=0, grid=(n_tiles,),
            in_specs=in_specs, out_specs=out_spec),
        compiler_params=pltpu.CompilerParams(
            dimension_semantics=("parallel",),
            vmem_limit_bytes=32 * 1024 * 1024),
    )(x_flat, *weights)

    # Layout glue on bf16: lanes are [ky,kx,w,c] (+zero pad); -> NCHW
    # (R, NC, 2*Hp, 2*Wp).
    out = out[:, :lane_w].reshape(r_pad, hp, 2, 2, wp, nc)
    out = jnp.transpose(out, (0, 5, 1, 2, 4, 3)).reshape(r_pad, nc,
                                                         2 * hp, 2 * wp)
    return out[:r]


# ----------------------------------------------------------------------------
# Pure-JAX reference (mirrors the kernel's bf16-operand / f32-accum precision)
# ----------------------------------------------------------------------------
def reference_mask_head(pooled_nhwc, params):
    bf16 = jnp.bfloat16
    x = pooled_nhwc
    for (w, b) in params["convs"]:
        x = lax.conv_general_dilated(
            x.astype(bf16), w.astype(bf16), window_strides=(1, 1),
            padding="SAME", dimension_numbers=("NHWC", "HWIO", "NHWC"),
            preferred_element_type=jnp.float32) + b[None, None, None, :]
        x = jax.nn.relu(x)
    wd, bd = params["deconv"]
    y = jnp.einsum("nhwc,uvcd->nhuwvd", x.astype(bf16), wd.astype(bf16),
                   preferred_element_type=jnp.float32)
    r, h, _, w_, _, dd = y.shape
    y = y.reshape(r, 2 * h, 2 * w_, dd) + bd[None, None, None, :]
    y = jax.nn.relu(y)
    wpred, bpred = params["pred"]
    logits = jnp.einsum("nhwc,cd->nhwd", y.astype(bf16), wpred.astype(bf16),
                        preferred_element_type=jnp.float32) + bpred
    return jnp.transpose(logits, (0, 3, 1, 2))


if __name__ == "__main__":
    key = jax.random.PRNGKey(0)
    kf, kp = jax.random.split(key)

    N, Cin, Hf, Wf = 2, 4, 16, 16     # backbone features: (N, C, H, W) NCHW
    D, NC, Hp = 8, 4, 8               # head dim, classes, pooled size

    features = jax.random.normal(kf, (N, Cin, Hf, Wf), jnp.float32)
    boxes = jnp.array([[1.0, 2.0, 9.0, 12.0],
                       [3.5, 1.0, 13.0, 8.0],
                       [0.0, 0.0, 15.0, 15.0],
                       [5.0, 6.0, 11.0, 14.0]], jnp.float32)   # proposals
    box_batch = jnp.array([0, 0, 1, 1], jnp.int32)
    params = init_params(kp, Cin, D, NC)

    logits = mask_head_forward(features, boxes, box_batch, params,
                               pooled_size=Hp, num_classes=NC)
    logits = jax.block_until_ready(logits)

    # reference check (TODO(synk): ROIAlign convention differs from torchvision
    # MaskROIHead's sampling_ratio / spatial_scale / aligned handling)
    feat_nhwc = jnp.transpose(features, (0, 2, 3, 1))
    pooled = roi_align(feat_nhwc, boxes, box_batch, Hp)
    ref = reference_mask_head(pooled, params)
    assert logits.shape == (boxes.shape[0], NC, 2 * Hp, 2 * Hp), logits.shape
    np.testing.assert_allclose(np.asarray(logits.astype(jnp.float32)),
                               np.asarray(ref), rtol=2e-2, atol=2e-2)
    print("KERNEL_OK")
</pallas_src>

<mosaic_0001>
module attributes {stable_mosaic.version = 11 : i64} {
  func.func @_mask_head_kernel(%arg0: i32, %arg1: memref<16x32xbf16, #tpu.memory_space<vmem>>, %arg2: memref<3x32x64xbf16, #tpu.memory_space<vmem>>, %arg3: memref<1x64xf32, #tpu.memory_space<vmem>>, %arg4: memref<3x64x64xbf16, #tpu.memory_space<vmem>>, %arg5: memref<1x64xf32, #tpu.memory_space<vmem>>, %arg6: memref<3x64x64xbf16, #tpu.memory_space<vmem>>, %arg7: memref<1x64xf32, #tpu.memory_space<vmem>>, %arg8: memref<3x64x64xbf16, #tpu.memory_space<vmem>>, %arg9: memref<1x64xf32, #tpu.memory_space<vmem>>, %arg10: memref<64x256xbf16, #tpu.memory_space<vmem>>, %arg11: memref<1x256xf32, #tpu.memory_space<vmem>>, %arg12: memref<256x128xbf16, #tpu.memory_space<vmem>>, %arg13: memref<1x128xf32, #tpu.memory_space<vmem>>, %arg14: memref<16x128xbf16, #tpu.memory_space<vmem>>) attributes {dimension_semantics = [#tpu.dimension_semantics<parallel>], iteration_bounds = array<i64: 2>, scalar_prefetch = 0 : i64, scratch_operands = 0 : i64, tpu.core_type = #tpu.core_type<tc>, window_params = [{transform_indices = @transform_0, window_bounds = array<i64: 16, 32>}, {pipeline_mode = #tpu.pipeline_mode<synchronous>, transform_indices = @transform_1, window_bounds = array<i64: 3, 32, 64>}, {pipeline_mode = #tpu.pipeline_mode<synchronous>, transform_indices = @transform_2, window_bounds = array<i64: 1, 64>}, {pipeline_mode = #tpu.pipeline_mode<synchronous>, transform_indices = @transform_3, window_bounds = array<i64: 3, 64, 64>}, {pipeline_mode = #tpu.pipeline_mode<synchronous>, transform_indices = @transform_4, window_bounds = array<i64: 1, 64>}, {pipeline_mode = #tpu.pipeline_mode<synchronous>, transform_indices = @transform_5, window_bounds = array<i64: 3, 64, 64>}, {pipeline_mode = #tpu.pipeline_mode<synchronous>, transform_indices = @transform_6, window_bounds = array<i64: 1, 64>}, {pipeline_mode = #tpu.pipeline_mode<synchronous>, transform_indices = @transform_7, window_bounds = array<i64: 3, 64, 64>}, {pipeline_mode = #tpu.pipeline_mode<synchronous>, transform_indices = @transform_8, window_bounds = array<i64: 1, 64>}, {pipeline_mode = #tpu.pipeline_mode<synchronous>, transform_indices = @transform_9, window_bounds = array<i64: 64, 256>}, {pipeline_mode = #tpu.pipeline_mode<synchronous>, transform_indices = @transform_10, window_bounds = array<i64: 1, 256>}, {pipeline_mode = #tpu.pipeline_mode<synchronous>, transform_indices = @transform_11, window_bounds = array<i64: 256, 128>}, {pipeline_mode = #tpu.pipeline_mode<synchronous>, transform_indices = @transform_12, window_bounds = array<i64: 1, 128>}, {transform_indices = @transform_13, window_bounds = array<i64: 16, 128>}]} {
    %c0 = arith.constant 0 : index
    %c0_0 = arith.constant 0 : index
    %0 = vector.load %arg1[%c0, %c0_0] : memref<16x32xbf16, #tpu.memory_space<vmem>>, vector<16x32xbf16>
    %1 = arith.extf %0 : vector<16x32xbf16> to vector<16x32xf32>
    %2 = tpu.iota {dimensions = array<i32: 0>} : vector<16x1xi32>
    %c8_i32 = arith.constant 8 : i32
    %c0_i32 = arith.constant 0 : i32
    %3 = arith.cmpi eq, %c8_i32, %c0_i32 : i32
    %c1_i32 = arith.constant 1 : i32
    %4 = arith.select %3, %c1_i32, %c8_i32 : i32
    %5 = vector.broadcast %4 : i32 to vector<16x1xi32>
    %6 = arith.remsi %2, %5 : vector<16x1xi32>
    %c0_i32_1 = arith.constant 0 : i32
    %7 = vector.broadcast %c0_i32_1 : i32 to vector<16x1xi32>
    %8 = arith.cmpi ne, %6, %7 : vector<16x1xi32>
    %c0_i32_2 = arith.constant 0 : i32
    %9 = vector.broadcast %c0_i32_2 : i32 to vector<16x1xi32>
    %10 = arith.cmpi slt, %6, %9 : vector<16x1xi32>
    %c0_i32_3 = arith.constant 0 : i32
    %11 = arith.cmpi slt, %4, %c0_i32_3 : i32
    %12 = vector.broadcast %11 : i1 to vector<16x1xi1>
    %13 = vector.broadcast %12 : vector<16x1xi1> to vector<16x1xi1>
    %14 = arith.xori %10, %13 : vector<16x1xi1>
    %15 = arith.andi %14, %8 : vector<16x1xi1>
    %16 = vector.broadcast %4 : i32 to vector<16x1xi32>
    %17 = arith.addi %6, %16 : vector<16x1xi32>
    %18 = arith.select %15, %17, %6 : vector<16x1xi1>, vector<16x1xi32>
    %c0_i32_4 = arith.constant 0 : i32
    %19 = vector.broadcast %c0_i32_4 : i32 to vector<16x1xi32>
    %20 = arith.cmpi eq, %18, %19 : vector<16x1xi32>
    %c7_i32 = arith.constant 7 : i32
    %21 = vector.broadcast %c7_i32 : i32 to vector<16x1xi32>
    %22 = arith.cmpi eq, %18, %21 : vector<16x1xi32>
    %c1_i32_5 = arith.constant 1 : i32
    %23 = tpu.dynamic_rotate %1 by %c1_i32_5 dim 0 : vector<16x32xf32>, i32 -> vector<16x32xf32>
    %cst = arith.constant 0.000000e+00 : f32
    %24 = vector.shape_cast %20 : vector<16x1xi1> to vector<16x1xi1>
    %25 = vector.broadcast %24 : vector<16x1xi1> to vector<16x32xi1>
    %26 = vector.broadcast %cst : f32 to vector<16x32xf32>
    %27 = arith.select %25, %26, %23 : vector<16x32xi1>, vector<16x32xf32>
    %c15_i32 = arith.constant 15 : i32
    %28 = tpu.dynamic_rotate %1 by %c15_i32 dim 0 : vector<16x32xf32>, i32 -> vector<16x32xf32>
    %cst_6 = arith.constant 0.000000e+00 : f32
    %29 = vector.shape_cast %22 : vector<16x1xi1> to vector<16x1xi1>
    %30 = vector.broadcast %29 : vector<16x1xi1> to vector<16x32xi1>
    %31 = vector.broadcast %cst_6 : f32 to vector<16x32xf32>
    %32 = arith.select %30, %31, %28 : vector<16x32xi1>, vector<16x32xf32>
    %33 = arith.truncf %27 : vector<16x32xf32> to vector<16x32xbf16>
    %c0_7 = arith.constant 0 : index
    %c0_8 = arith.constant 0 : index
    %c0_9 = arith.constant 0 : index
    %34 = vector.load %arg2[%c0_7, %c0_8, %c0_9] : memref<3x32x64xbf16, #tpu.memory_space<vmem>>, vector<1x32x64xbf16>
    %35 = vector.shape_cast %34 : vector<1x32x64xbf16> to vector<32x64xbf16>
    %cst_10 = arith.constant dense<0.000000e+00> : vector<16x64xf32>
    %36 = tpu.matmul %33, %35, %cst_10 {dimension_numbers = #tpu.dot_dimension_numbers<[1], [0], [0], [1], [0, 0, 1, 1], [], []>} : vector<16x32xbf16>, vector<32x64xbf16>, vector<16x64xf32> -> vector<16x64xf32>
    %37 = arith.truncf %1 : vector<16x32xf32> to vector<16x32xbf16>
    %c1 = arith.constant 1 : index
    %c0_11 = arith.constant 0 : index
    %c0_12 = arith.constant 0 : index
    %38 = vector.load %arg2[%c1, %c0_11, %c0_12] : memref<3x32x64xbf16, #tpu.memory_space<vmem>>, vector<1x32x64xbf16>
    %39 = vector.shape_cast %38 : vector<1x32x64xbf16> to vector<32x64xbf16>
    %cst_13 = arith.constant dense<0.000000e+00> : vector<16x64xf32>
    %40 = tpu.matmul %37, %39, %cst_13 {dimension_numbers = #tpu.dot_dimension_numbers<[1], [0], [0], [1], [0, 0, 1, 1], [], []>} : vector<16x32xbf16>, vector<32x64xbf16>, vector<16x64xf32> -> vector<16x64xf32>
    %41 = arith.addf %36, %40 : vector<16x64xf32>
    %42 = arith.truncf %32 : vector<16x32xf32> to vector<16x32xbf16>
    %c2 = arith.constant 2 : index
    %c0_14 = arith.constant 0 : index
    %c0_15 = arith.constant 0 : index
    %43 = vector.load %arg2[%c2, %c0_14, %c0_15] : memref<3x32x64xbf16, #tpu.memory_space<vmem>>, vector<1x32x64xbf16>
    %44 = vector.shape_cast %43 : vector<1x32x64xbf16> to vector<32x64xbf16>
    %cst_16 = arith.constant dense<0.000000e+00> : vector<16x64xf32>
    %45 = tpu.matmul %42, %44, %cst_16 {dimension_numbers = #tpu.dot_dimension_numbers<[1], [0], [0], [1], [0, 0, 1, 1], [], []>} : vector<16x32xbf16>, vector<32x64xbf16>, vector<16x64xf32> -> vector<16x64xf32>
    %46 = arith.addf %41, %45 : vector<16x64xf32>
    %c0_17 = arith.constant 0 : index
    %c0_18 = arith.constant 0 : index
    %47 = vector.load %arg3[%c0_17, %c0_18] : memref<1x64xf32, #tpu.memory_space<vmem>>, vector<1x64xf32>
    %48 = vector.broadcast %47 : vector<1x64xf32> to vector<16x64xf32>
    %49 = arith.addf %46, %48 : vector<16x64xf32>
    %cst_19 = arith.constant 0.000000e+00 : f32
    %50 = vector.broadcast %cst_19 : f32 to vector<16x64xf32>
    %51 = arith.maximumf %49, %50 : vector<16x64xf32>
    %c1_i32_20 = arith.constant 1 : i32
    %52 = tpu.dynamic_rotate %51 by %c1_i32_20 dim 0 : vector<16x64xf32>, i32 -> vector<16x64xf32>
    %cst_21 = arith.constant 0.000000e+00 : f32
    %53 = vector.shape_cast %20 : vector<16x1xi1> to vector<16x1xi1>
    %54 = vector.broadcast %53 : vector<16x1xi1> to vector<16x64xi1>
    %55 = vector.broadcast %cst_21 : f32 to vector<16x64xf32>
    %56 = arith.select %54, %55, %52 : vector<16x64xi1>, vector<16x64xf32>
    %c15_i32_22 = arith.constant 15 : i32
    %57 = tpu.dynamic_rotate %51 by %c15_i32_22 dim 0 : vector<16x64xf32>, i32 -> vector<16x64xf32>
    %cst_23 = arith.constant 0.000000e+00 : f32
    %58 = vector.shape_cast %22 : vector<16x1xi1> to vector<16x1xi1>
    %59 = vector.broadcast %58 : vector<16x1xi1> to vector<16x64xi1>
    %60 = vector.broadcast %cst_23 : f32 to vector<16x64xf32>
    %61 = arith.select %59, %60, %57 : vector<16x64xi1>, vector<16x64xf32>
    %62 = arith.truncf %56 : vector<16x64xf32> to vector<16x64xbf16>
    %c0_24 = arith.constant 0 : index
    %c0_25 = arith.constant 0 : index
    %c0_26 = arith.constant 0 : index
    %63 = vector.load %arg4[%c0_24, %c0_25, %c0_26] : memref<3x64x64xbf16, #tpu.memory_space<vmem>>, vector<1x64x64xbf16>
    %64 = vector.shape_cast %63 : vector<1x64x64xbf16> to vector<64x64xbf16>
    %cst_27 = arith.constant dense<0.000000e+00> : vector<16x64xf32>
    %65 = tpu.matmul %62, %64, %cst_27 {dimension_numbers = #tpu.dot_dimension_numbers<[1], [0], [0], [1], [0, 0, 1, 1], [], []>} : vector<16x64xbf16>, vector<64x64xbf16>, vector<16x64xf32> -> vector<16x64xf32>
    %66 = arith.truncf %51 : vector<16x64xf32> to vector<16x64xbf16>
    %c1_28 = arith.constant 1 : index
    %c0_29 = arith.constant 0 : index
    %c0_30 = arith.constant 0 : index
    %67 = vector.load %arg4[%c1_28, %c0_29, %c0_30] : memref<3x64x64xbf16, #tpu.memory_space<vmem>>, vector<1x64x64xbf16>
    %68 = vector.shape_cast %67 : vector<1x64x64xbf16> to vector<64x64xbf16>
    %cst_31 = arith.constant dense<0.000000e+00> : vector<16x64xf32>
    %69 = tpu.matmul %66, %68, %cst_31 {dimension_numbers = #tpu.dot_dimension_numbers<[1], [0], [0], [1], [0, 0, 1, 1], [], []>} : vector<16x64xbf16>, vector<64x64xbf16>, vector<16x64xf32> -> vector<16x64xf32>
    %70 = arith.addf %65, %69 : vector<16x64xf32>
    %71 = arith.truncf %61 : vector<16x64xf32> to vector<16x64xbf16>
    %c2_32 = arith.constant 2 : index
    %c0_33 = arith.constant 0 : index
    %c0_34 = arith.constant 0 : index
    %72 = vector.load %arg4[%c2_32, %c0_33, %c0_34] : memref<3x64x64xbf16, #tpu.memory_space<vmem>>, vector<1x64x64xbf16>
    %73 = vector.shape_cast %72 : vector<1x64x64xbf16> to vector<64x64xbf16>
    %cst_35 = arith.constant dense<0.000000e+00> : vector<16x64xf32>
    %74 = tpu.matmul %71, %73, %cst_35 {dimension_numbers = #tpu.dot_dimension_numbers<[1], [0], [0], [1], [0, 0, 1, 1], [], []>} : vector<16x64xbf16>, vector<64x64xbf16>, vector<16x64xf32> -> vector<16x64xf32>
    %75 = arith.addf %70, %74 : vector<16x64xf32>
    %c0_36 = arith.constant 0 : index
    %c0_37 = arith.constant 0 : index
    %76 = vector.load %arg5[%c0_36, %c0_37] : memref<1x64xf32, #tpu.memory_space<vmem>>, vector<1x64xf32>
    %77 = vector.broadcast %76 : vector<1x64xf32> to vector<16x64xf32>
    %78 = arith.addf %75, %77 : vector<16x64xf32>
    %cst_38 = arith.constant 0.000000e+00 : f32
    %79 = vector.broadcast %cst_38 : f32 to vector<16x64xf32>
    %80 = arith.maximumf %78, %79 : vector<16x64xf32>
    %c1_i32_39 = arith.constant 1 : i32
    %81 = tpu.dynamic_rotate %80 by %c1_i32_39 dim 0 : vector<16x64xf32>, i32 -> vector<16x64xf32>
    %cst_40 = arith.constant 0.000000e+00 : f32
    %82 = vector.shape_cast %20 : vector<16x1xi1> to vector<16x1xi1>
    %83 = vector.broadcast %82 : vector<16x1xi1> to vector<16x64xi1>
    %84 = vector.broadcast %cst_40 : f32 to vector<16x64xf32>
    %85 = arith.select %83, %84, %81 : vector<16x64xi1>, vector<16x64xf32>
    %c15_i32_41 = arith.constant 15 : i32
    %86 = tpu.dynamic_rotate %80 by %c15_i32_41 dim 0 : vector<16x64xf32>, i32 -> vector<16x64xf32>
    %cst_42 = arith.constant 0.000000e+00 : f32
    %87 = vector.shape_cast %22 : vector<16x1xi1> to vector<16x1xi1>
    %88 = vector.broadcast %87 : vector<16x1xi1> to vector<16x64xi1>
    %89 = vector.broadcast %cst_42 : f32 to vector<16x64xf32>
    %90 = arith.select %88, %89, %86 : vector<16x64xi1>, vector<16x64xf32>
    %91 = arith.truncf %85 : vector<16x64xf32> to vector<16x64xbf16>
    %c0_43 = arith.constant 0 : index
    %c0_44 = arith.constant 0 : index
    %c0_45 = arith.constant 0 : index
    %92 = vector.load %arg6[%c0_43, %c0_44, %c0_45] : memref<3x64x64xbf16, #tpu.memory_space<vmem>>, vector<1x64x64xbf16>
    %93 = vector.shape_cast %92 : vector<1x64x64xbf16> to vector<64x64xbf16>
    %cst_46 = arith.constant dense<0.000000e+00> : vector<16x64xf32>
    %94 = tpu.matmul %91, %93, %cst_46 {dimension_numbers = #tpu.dot_dimension_numbers<[1], [0], [0], [1], [0, 0, 1, 1], [], []>} : vector<16x64xbf16>, vector<64x64xbf16>, vector<16x64xf32> -> vector<16x64xf32>
    %95 = arith.truncf %80 : vector<16x64xf32> to vector<16x64xbf16>
    %c1_47 = arith.constant 1 : index
    %c0_48 = arith.constant 0 : index
    %c0_49 = arith.constant 0 : index
    %96 = vector.load %arg6[%c1_47, %c0_48, %c0_49] : memref<3x64x64xbf16, #tpu.memory_space<vmem>>, vector<1x64x64xbf16>
    %97 = vector.shape_cast %96 : vector<1x64x64xbf16> to vector<64x64xbf16>
    %cst_50 = arith.constant dense<0.000000e+00> : vector<16x64xf32>
    %98 = tpu.matmul %95, %97, %cst_50 {dimension_numbers = #tpu.dot_dimension_numbers<[1], [0], [0], [1], [0, 0, 1, 1], [], []>} : vector<16x64xbf16>, vector<64x64xbf16>, vector<16x64xf32> -> vector<16x64xf32>
    %99 = arith.addf %94, %98 : vector<16x64xf32>
    %100 = arith.truncf %90 : vector<16x64xf32> to vector<16x64xbf16>
    %c2_51 = arith.constant 2 : index
    %c0_52 = arith.constant 0 : index
    %c0_53 = arith.constant 0 : index
    %101 = vector.load %arg6[%c2_51, %c0_52, %c0_53] : memref<3x64x64xbf16, #tpu.memory_space<vmem>>, vector<1x64x64xbf16>
    %102 = vector.shape_cast %101 : vector<1x64x64xbf16> to vector<64x64xbf16>
    %cst_54 = arith.constant dense<0.000000e+00> : vector<16x64xf32>
    %103 = tpu.matmul %100, %102, %cst_54 {dimension_numbers = #tpu.dot_dimension_numbers<[1], [0], [0], [1], [0, 0, 1, 1], [], []>} : vector<16x64xbf16>, vector<64x64xbf16>, vector<16x64xf32> -> vector<16x64xf32>
    %104 = arith.addf %99, %103 : vector<16x64xf32>
    %c0_55 = arith.constant 0 : index
    %c0_56 = arith.constant 0 : index
    %105 = vector.load %arg7[%c0_55, %c0_56] : memref<1x64xf32, #tpu.memory_space<vmem>>, vector<1x64xf32>
    %106 = vector.broadcast %105 : vector<1x64xf32> to vector<16x64xf32>
    %107 = arith.addf %104, %106 : vector<16x64xf32>
    %cst_57 = arith.constant 0.000000e+00 : f32
    %108 = vector.broadcast %cst_57 : f32 to vector<16x64xf32>
    %109 = arith.maximumf %107, %108 : vector<16x64xf32>
    %c1_i32_58 = arith.constant 1 : i32
    %110 = tpu.dynamic_rotate %109 by %c1_i32_58 dim 0 : vector<16x64xf32>, i32 -> vector<16x64xf32>
    %cst_59 = arith.constant 0.000000e+00 : f32
    %111 = vector.shape_cast %20 : vector<16x1xi1> to vector<16x1xi1>
    %112 = vector.broadcast %111 : vector<16x1xi1> to vector<16x64xi1>
    %113 = vector.broadcast %cst_59 : f32 to vector<16x64xf32>
    %114 = arith.select %112, %113, %110 : vector<16x64xi1>, vector<16x64xf32>
    %c15_i32_60 = arith.constant 15 : i32
    %115 = tpu.dynamic_rotate %109 by %c15_i32_60 dim 0 : vector<16x64xf32>, i32 -> vector<16x64xf32>
    %cst_61 = arith.constant 0.000000e+00 : f32
    %116 = vector.shape_cast %22 : vector<16x1xi1> to vector<16x1xi1>
    %117 = vector.broadcast %116 : vector<16x1xi1> to vector<16x64xi1>
    %118 = vector.broadcast %cst_61 : f32 to vector<16x64xf32>
    %119 = arith.select %117, %118, %115 : vector<16x64xi1>, vector<16x64xf32>
    %120 = arith.truncf %114 : vector<16x64xf32> to vector<16x64xbf16>
    %c0_62 = arith.constant 0 : index
    %c0_63 = arith.constant 0 : index
    %c0_64 = arith.constant 0 : index
    %121 = vector.load %arg8[%c0_62, %c0_63, %c0_64] : memref<3x64x64xbf16, #tpu.memory_space<vmem>>, vector<1x64x64xbf16>
    %122 = vector.shape_cast %121 : vector<1x64x64xbf16> to vector<64x64xbf16>
    %cst_65 = arith.constant dense<0.000000e+00> : vector<16x64xf32>
    %123 = tpu.matmul %120, %122, %cst_65 {dimension_numbers = #tpu.dot_dimension_numbers<[1], [0], [0], [1], [0, 0, 1, 1], [], []>} : vector<16x64xbf16>, vector<64x64xbf16>, vector<16x64xf32> -> vector<16x64xf32>
    %124 = arith.truncf %109 : vector<16x64xf32> to vector<16x64xbf16>
    %c1_66 = arith.constant 1 : index
    %c0_67 = arith.constant 0 : index
    %c0_68 = arith.constant 0 : index
    %125 = vector.load %arg8[%c1_66, %c0_67, %c0_68] : memref<3x64x64xbf16, #tpu.memory_space<vmem>>, vector<1x64x64xbf16>
    %126 = vector.shape_cast %125 : vector<1x64x64xbf16> to vector<64x64xbf16>
    %cst_69 = arith.constant dense<0.000000e+00> : vector<16x64xf32>
    %127 = tpu.matmul %124, %126, %cst_69 {dimension_numbers = #tpu.dot_dimension_numbers<[1], [0], [0], [1], [0, 0, 1, 1], [], []>} : vector<16x64xbf16>, vector<64x64xbf16>, vector<16x64xf32> -> vector<16x64xf32>
    %128 = arith.addf %123, %127 : vector<16x64xf32>
    %129 = arith.truncf %119 : vector<16x64xf32> to vector<16x64xbf16>
    %c2_70 = arith.constant 2 : index
    %c0_71 = arith.constant 0 : index
    %c0_72 = arith.constant 0 : index
    %130 = vector.load %arg8[%c2_70, %c0_71, %c0_72] : memref<3x64x64xbf16, #tpu.memory_space<vmem>>, vector<1x64x64xbf16>
    %131 = vector.shape_cast %130 : vector<1x64x64xbf16> to vector<64x64xbf16>
    %cst_73 = arith.constant dense<0.000000e+00> : vector<16x64xf32>
    %132 = tpu.matmul %129, %131, %cst_73 {dimension_numbers = #tpu.dot_dimension_numbers<[1], [0], [0], [1], [0, 0, 1, 1], [], []>} : vector<16x64xbf16>, vector<64x64xbf16>, vector<16x64xf32> -> vector<16x64xf32>
    %133 = arith.addf %128, %132 : vector<16x64xf32>
    %c0_74 = arith.constant 0 : index
    %c0_75 = arith.constant 0 : index
    %134 = vector.load %arg9[%c0_74, %c0_75] : memref<1x64xf32, #tpu.memory_space<vmem>>, vector<1x64xf32>
    %135 = vector.broadcast %134 : vector<1x64xf32> to vector<16x64xf32>
    %136 = arith.addf %133, %135 : vector<16x64xf32>
    %cst_76 = arith.constant 0.000000e+00 : f32
    %137 = vector.broadcast %cst_76 : f32 to vector<16x64xf32>
    %138 = arith.maximumf %136, %137 : vector<16x64xf32>
    %139 = arith.truncf %138 : vector<16x64xf32> to vector<16x64xbf16>
    %c0_77 = arith.constant 0 : index
    %c0_78 = arith.constant 0 : index
    %140 = vector.load %arg10[%c0_77, %c0_78] : memref<64x256xbf16, #tpu.memory_space<vmem>>, vector<64x256xbf16>
    %cst_79 = arith.constant dense<0.000000e+00> : vector<16x256xf32>
    %141 = tpu.matmul %139, %140, %cst_79 {dimension_numbers = #tpu.dot_dimension_numbers<[1], [0], [0], [1], [0, 0, 1, 1], [], []>} : vector<16x64xbf16>, vector<64x256xbf16>, vector<16x256xf32> -> vector<16x256xf32>
    %c0_80 = arith.constant 0 : index
    %c0_81 = arith.constant 0 : index
    %142 = vector.load %arg11[%c0_80, %c0_81] : memref<1x256xf32, #tpu.memory_space<vmem>>, vector<1x256xf32>
    %143 = vector.broadcast %142 : vector<1x256xf32> to vector<16x256xf32>
    %144 = arith.addf %141, %143 : vector<16x256xf32>
    %cst_82 = arith.constant 0.000000e+00 : f32
    %145 = vector.broadcast %cst_82 : f32 to vector<16x256xf32>
    %146 = arith.maximumf %144, %145 : vector<16x256xf32>
    %147 = arith.truncf %146 : vector<16x256xf32> to vector<16x256xbf16>
    %c0_83 = arith.constant 0 : index
    %c0_84 = arith.constant 0 : index
    %148 = vector.load %arg12[%c0_83, %c0_84] : memref<256x128xbf16, #tpu.memory_space<vmem>>, vector<256x128xbf16>
    %cst_85 = arith.constant dense<0.000000e+00> : vector<16x128xf32>
    %149 = tpu.matmul %147, %148, %cst_85 {dimension_numbers = #tpu.dot_dimension_numbers<[1], [0], [0], [1], [0, 0, 1, 1], [], []>} : vector<16x256xbf16>, vector<256x128xbf16>, vector<16x128xf32> -> vector<16x128xf32>
    %c0_86 = arith.constant 0 : index
    %c0_87 = arith.constant 0 : index
    %150 = vector.load %arg13[%c0_86, %c0_87] : memref<1x128xf32, #tpu.memory_space<vmem>>, vector<1x128xf32>
    %151 = vector.broadcast %150 : vector<1x128xf32> to vector<16x128xf32>
    %152 = arith.addf %149, %151 : vector<16x128xf32>
    %153 = arith.truncf %152 : vector<16x128xf32> to vector<16x128xbf16>
    %c0_88 = arith.constant 0 : index
    %c0_89 = arith.constant 0 : index
    %154 = vector.load %arg14[%c0_88, %c0_89] : memref<16x128xbf16, #tpu.memory_space<vmem>>, vector<16x128xbf16>
    tpu.vector_store %arg14[%c0_88, %c0_89], %153 {strides = array<i32>} : memref<16x128xbf16, #tpu.memory_space<vmem>>, vector<16x128xbf16>,
    return
  }
  func.func @transform_0(%arg0: i32) -> (i32, i32) {
    %c0_i32 = arith.constant 0 : i32
    %c0_i32_0 = arith.constant 0 : i32
    return %arg0, %c0_i32 : i32, i32
  }
  func.func @transform_1(%arg0: i32) -> (i32, i32, i32) {
    %c0_i32 = arith.constant 0 : i32
    %c0_i32_0 = arith.constant 0 : i32
    %c0_i32_1 = arith.constant 0 : i32
    %c0_i32_2 = arith.constant 0 : i32
    return %c0_i32, %c0_i32_0, %c0_i32_1 : i32, i32, i32
  }
  func.func @transform_2(%arg0: i32) -> (i32, i32) {
    %c0_i32 = arith.constant 0 : i32
    %c0_i32_0 = arith.constant 0 : i32
    %c0_i32_1 = arith.constant 0 : i32
    return %c0_i32, %c0_i32_0 : i32, i32
  }
  func.func @transform_3(%arg0: i32) -> (i32, i32, i32) {
    %c0_i32 = arith.constant 0 : i32
    %c0_i32_0 = arith.constant 0 : i32
    %c0_i32_1 = arith.constant 0 : i32
    %c0_i32_2 = arith.constant 0 : i32
    return %c0_i32, %c0_i32_0, %c0_i32_1 : i32, i32, i32
  }
  func.func @transform_4(%arg0: i32) -> (i32, i32) {
    %c0_i32 = arith.constant 0 : i32
    %c0_i32_0 = arith.constant 0 : i32
    %c0_i32_1 = arith.constant 0 : i32
    return %c0_i32, %c0_i32_0 : i32, i32
  }
  func.func @transform_5(%arg0: i32) -> (i32, i32, i32) {
    %c0_i32 = arith.constant 0 : i32
    %c0_i32_0 = arith.constant 0 : i32
    %c0_i32_1 = arith.constant 0 : i32
    %c0_i32_2 = arith.constant 0 : i32
    return %c0_i32, %c0_i32_0, %c0_i32_1 : i32, i32, i32
  }
  func.func @transform_6(%arg0: i32) -> (i32, i32) {
    %c0_i32 = arith.constant 0 : i32
    %c0_i32_0 = arith.constant 0 : i32
    %c0_i32_1 = arith.constant 0 : i32
    return %c0_i32, %c0_i32_0 : i32, i32
  }
  func.func @transform_7(%arg0: i32) -> (i32, i32, i32) {
    %c0_i32 = arith.constant 0 : i32
    %c0_i32_0 = arith.constant 0 : i32
    %c0_i32_1 = arith.constant 0 : i32
    %c0_i32_2 = arith.constant 0 : i32
    return %c0_i32, %c0_i32_0, %c0_i32_1 : i32, i32, i32
  }
  func.func @transform_8(%arg0: i32) -> (i32, i32) {
    %c0_i32 = arith.constant 0 : i32
    %c0_i32_0 = arith.constant 0 : i32
    %c0_i32_1 = arith.constant 0 : i32
    return %c0_i32, %c0_i32_0 : i32, i32
  }
  func.func @transform_9(%arg0: i32) -> (i32, i32) {
    %c0_i32 = arith.constant 0 : i32
    %c0_i32_0 = arith.constant 0 : i32
    %c0_i32_1 = arith.constant 0 : i32
    return %c0_i32, %c0_i32_0 : i32, i32
  }
  func.func @transform_10(%arg0: i32) -> (i32, i32) {
    %c0_i32 = arith.constant 0 : i32
    %c0_i32_0 = arith.constant 0 : i32
    %c0_i32_1 = arith.constant 0 : i32
    return %c0_i32, %c0_i32_0 : i32, i32
  }
  func.func @transform_11(%arg0: i32) -> (i32, i32) {
    %c0_i32 = arith.constant 0 : i32
    %c0_i32_0 = arith.constant 0 : i32
    %c0_i32_1 = arith.constant 0 : i32
    return %c0_i32, %c0_i32_0 : i32, i32
  }
  func.func @transform_12(%arg0: i32) -> (i32, i32) {
    %c0_i32 = arith.constant 0 : i32
    %c0_i32_0 = arith.constant 0 : i32
    %c0_i32_1 = arith.constant 0 : i32
    return %c0_i32, %c0_i32_0 : i32, i32
  }
  func.func @transform_13(%arg0: i32) -> (i32, i32) {
    %c0_i32 = arith.constant 0 : i32
    %c0_i32_0 = arith.constant 0 : i32
    return %arg0, %c0_i32 : i32, i32
  }
}

</mosaic_0001>

<bundles_post_ra>
// kernel: tpu_custom_call.1
= control target key start
LH: loop header
LB: loop body
LE: loop exit
PB: predicated region body
PF: predicated region fallthrough
CT: control target
= control target key end

     0   :  { %s2930_s0 = inlined_call_operand.hbm [shape: bf16[32,32], index: 0, kind: input, shape index: {}]   ;;  %s2931_s1 = inlined_call_operand.hbm [shape: bf16[3,32,64], index: 1, kind: input, shape index: {}]   ;;  %s2932_s2 = inlined_call_operand.vmem [shape: f32[1,64], index: 2, kind: input, shape index: {}]   ;;  %s2933_s3 = inlined_call_operand.hbm [shape: bf16[3,64,64], index: 3, kind: input, shape index: {}]   ;;  %s2934_s4 = inlined_call_operand.hbm [shape: f32[1,64], index: 4, kind: input, shape index: {}]   ;;  %s2935_s5 = inlined_call_operand.hbm [shape: bf16[3,64,64], index: 5, kind: input, shape index: {}]   ;;  %s2936_s6 = inlined_call_operand.vmem [shape: f32[1,64], index: 6, kind: input, shape index: {}]   ;;  %s2937_s7 = inlined_call_operand.hbm [shape: bf16[3,64,64], index: 7, kind: input, shape index: {}]   ;;  %s2938_s8 = inlined_call_operand.vmem [shape: f32[1,64], index: 8, kind: input, shape index: {}]   ;;  %s2939_s9 = inlined_call_operand.hbm [shape: bf16[64,256], index: 9, kind: input, shape index: {}]   ;;  %s2940_s10 = inlined_call_operand.vmem [shape: f32[1,256], index: 10, kind: input, shape index: {}]   ;;  %s2941_s11 = inlined_call_operand.hbm [shape: bf16[256,128], index: 11, kind: input, shape index: {}]   ;;  %s2942_s12 = inlined_call_operand.vmem [shape: f32[1,128], index: 12, kind: input, shape index: {}]   ;;  %s2943_s13 = inlined_call_operand.hbm [shape: bf16[32,128], index: 13, kind: output, shape index: {}]  }
   0x1   :  { %2947 = sst [smem:[#allocation23_spill]] %s2931_s1 }
   0x2   :  { %2948 = sst [smem:[#allocation24_spill]] %s2933_s3 }
   0x3   :  { %2949 = sst [smem:[#allocation25_spill]] %s2934_s4 }
   0x4   :  { %2950 = sst [smem:[#allocation26_spill]] %s2935_s5 }
   0x5   :  { %2951 = sst [smem:[#allocation27_spill]] %s2937_s7 }
   0x6   :  { %2952 = sst [smem:[#allocation28_spill]] %s2939_s9 }
   0x7   :  { %2953 = sst [smem:[#allocation29_spill]] %s2943_s13 }
   0x8   :  { %18 = vsyncpa [#allocation3], 0 }
   0x9   :  { %20 = vsyncpa [#allocation3 + $0x1], 0 }
   0xa   :  { %21 = vsyncpa [#allocation6], 0 }
   0xb   :  { %22 = vsyncpa [#allocation9], 0 }
   0xc   :  { %23 = vsyncpa [#allocation12], 0 }
   0xd   :  { %24 = vsyncpa [#allocation15], 0 }
   0xe   :  { %25 = vsyncpa [#allocation4], 0 }
   0xf   :  { %27 = vsyncpa [#allocation4 + $0x1], 0  ;;  %s2608_s25 = smov 0   ;;  %s2610_s26 = smov 0  }
  0x10   :  { %s2612_s27 = smov 0   ;;  %s2614_s28 = smov 0  }
  0x11 LB: > { %s2954_s1 = sld [smem:[#allocation23_spill]]  ;;  %s2632_s15 = sadd.s32 4294967295, %s2523_s28   ;;  %s2523_s28 = sphi %s2614_s28, %s2981_s28   ;;  %s2519_s27 = sphi %s2612_s27, %s2980_s27   ;;  %s2515_s26 = sphi %s2610_s26, %s2979_s26   ;;  %s2511_s25 = sphi %s2608_s25, %s2978_s25  }
  0x12   : > { %p1690_p0 = scmp.ge.s32.totalorder %s2523_s28, 1  ;;  %p54_p1 = scmp.eq.s32.totalorder %s2632_s15, 0 }
  0x13   : > { %p342_p2 = scmp.lt.s32.totalorder %s2523_s28, 3  ;;  %s2525_s17 = smov [#allocation5]  }
  0x14   : > { %s355_s18 = sshll.u32 %s2525_s17, 4  ;;  %s2956_s4 = sld [smem:[#allocation25_spill]]  ;;  %s356_s18 = int_to_ptr.vmem [resolvable:$true] %s355_s18 }
  0x15   : > { %p2637_p3 = pnand %p1690_p0, %p342_p2  ;;  %s2958_s7 = sld [smem:[#allocation27_spill]] }
  0x16   : > { %s2526_s30 = smov [#allocation8]   ;;  %s2946_s13 = smov 4  }
  0x17   : > { %s353_s14 = sshll.u32 %s2954_s1, 4  ;;  %p2105_p4 = pneg %p2637_p3  ;;  %s354_s14 = int_to_ptr.hbm [resolvable:$true] %s353_s14 }
  0x18   : > { %s387_s17 = sshll.u32 %s2526_s30, 4  ;;  %s2945_s1 = smov 64   ;;  %s388_s17 = int_to_ptr.vmem [resolvable:$true] %s387_s17 }
  0x19   : > { %p2649_p6 = pnand %p2105_p4, %p54_p1  ;;  %s2959_s3 = sld [smem:[#allocation24_spill]] }
  0x1a   : > { %s385_s21 = sshll.u32 %s2956_s4, 4  ;;  %s2529_s23 = smov [#allocation11]   ;;  %s386_s21 = int_to_ptr.hbm [resolvable:$true] %s385_s21 }
  0x1b   : > { %s413_s29 = sshll.u32 %s2958_s7, 4  ;;  %s415_s24 = sshll.u32 %s2529_s23, 4  ;;  %s414_s29 = int_to_ptr.hbm [resolvable:$true] %s413_s29  ;;  %s416_s24 = int_to_ptr.vmem [resolvable:$true] %s415_s24 }
  0x1c   : > { %2108 = dma.hbm_to_vmem [thread:$0]  (!%p2649_p6), %s354_s14, 768, %s356_s18, [#allocation6], %s2945_s1, %s2945_s1, %s2946_s13  }
  0x1d   : > { %2114 = dma.hbm_to_vmem [thread:$0]  (!%p2649_p6), %s386_s21, 16, %s388_s17, [#allocation9]  }
  0x1e   : > { %2120 = dma.hbm_to_vmem [thread:$0]  (!%p2649_p6), %s414_s29, 1536, %s416_s24, [#allocation12], %s2945_s1, %s2945_s1, %s2946_s13  }
  0x1f   : > { %s370_s4 = sshll.u32 %s2959_s3, 4  ;;  %s2530_s30 = smov [#allocation7]   ;;  %s371_s4 = int_to_ptr.hbm [resolvable:$true] %s370_s4 }
  0x20   : > { %s372_s14 = sshll.u32 %s2530_s30, 4  ;;  %s2960_s5 = sld [smem:[#allocation26_spill]]  ;;  %s373_s14 = int_to_ptr.vmem [resolvable:$true] %s372_s14 }
  0x21   : > { %2111 = dma.hbm_to_vmem [thread:$0]  (!%p2649_p6), %s371_s4, 1536, %s373_s14, [#allocation6], %s2945_s1, %s2945_s1, %s2946_s13  }
  0x22   : > { %s2961_s9 = sld [smem:[#allocation28_spill]]  ;;  %s2531_s23 = smov [#allocation10]  }
  0x23   : > { %s398_s29 = sshll.u32 %s2531_s23, 4  ;;  %s2532_s7 = smov [#allocation13]   ;;  %s399_s29 = int_to_ptr.vmem [resolvable:$true] %s398_s29 }
  0x24   : > { %s432_s4 = sshll.u32 %s2532_s7, 4  ;;  %s2533_s24 = smov 128   ;;  %s433_s4 = int_to_ptr.vmem [resolvable:$true] %s432_s4 }
  0x25   : > { %s2534_s30 = smov 8   ;;  %s447_s17 = sshll.u32 %s2941_s11, 4  ;;  %s448_s17 = int_to_ptr.hbm [resolvable:$true] %s447_s17 }
  0x26   : > { %s396_s21 = sshll.u32 %s2960_s5, 4  ;;  %s1689_s23 = sadd.s32 4294967294, %s2523_s28   ;;  %s397_s21 = int_to_ptr.hbm [resolvable:$true] %s396_s21 }
  0x27   : > { %2117 = dma.hbm_to_vmem [thread:$0]  (!%p2649_p6), %s397_s21, 1536, %s399_s29, [#allocation9], %s2945_s1, %s2945_s1, %s2946_s13  }
  0x28   : > { %s430_s20 = sshll.u32 %s2961_s9, 4  ;;  %s2535_s21 = smov [#allocation14]   ;;  %s431_s20 = int_to_ptr.hbm [resolvable:$true] %s430_s20 }
  0x29   : > { %2123 = dma.hbm_to_vmem [thread:$0]  (!%p2649_p6), %s431_s20, 1024, %s433_s4, [#allocation12], %s2533_s24, %s2533_s24, %s2534_s30  }
  0x2a   : > { %s449_s19 = sshll.u32 %s2535_s21, 4  ;;  %s2699_s29 = sadd.s32 1, %s2523_s28   ;;  %s450_s19 = int_to_ptr.vmem [resolvable:$true] %s449_s19 }
  0x2b   : > { %2126 = dma.hbm_to_vmem [thread:$0]  (!%p2649_p6), %s448_s17, 2048, %s450_s19, [#allocation15], %s2945_s1, %s2945_s1, %s2946_s13  }
  0x2c   : > { %s40_s20 = sadd.s32 1, %s2519_s27  ;;  %s37_s7 = ssub.s32 %s2523_s28, %s2699_s29 }
  0x2d   : > { %p47_p7 = scmp.ne.s32.totalorder %s2519_s27, %s2515_s26  ;;  %p38_p8 = scmp.eq.s32.totalorder %s37_s7, 0 }
  0x2e   : > { %p48_p9 = scmp.eq.s32.totalorder %s2523_s28, 0  ;;  %p53_p10 = scmp.ne.s32.totalorder %s2515_s26, %s2511_s25 }
  0x2f   : > { %p329_p11 = scmp.eq.s32.totalorder %s2632_s15, 1  ;;  %p335_p0 = scmp.eq.s32.totalorder %s1689_s23, 1 }
  0x30   : > { %s2711_s4 = scalar_select %p38_p8, %s2519_s27, %s40_s20  }
  0x31   : > { %p2715_p12 = por %p54_p1, %p53_p10  ;;  %p2719_p13 = por %p329_p11, %p47_p7 }
  0x32   : > { %p49_p2 = por %p48_p9, %p47_p7  ;;  %s466_s30 = sand.u32 1, %s2519_s27  }
  0x33   : > { %p2724_p4 = por %p335_p0, %p53_p10  ;;  %p2142_p6 = scmp.lt.s32.totalorder %s2523_s28, 2 }
  0x34   : > { %s1699_s18 = sshll.u32 %s466_s30, 3  ;;  %s1999_s17 = sshll.u32 %s2523_s28, 3 }
  0x35   : > { %s475_s20 = scalar_lea.hbm %s2930_s0, %s1999_s17  ;;  %s470_s1 = scalar_lea.vmem [#allocation2], %s1699_s18 }
  0x36   : > { %s476_s7 = sshll.u32 %s475_s20, 4  ;;  %s478_s13 = sshll.u32 %s470_s1, 4  ;;  %s477_s7 = int_to_ptr.hbm [resolvable:$true] %s476_s7  ;;  %s479_s13 = int_to_ptr.vmem [resolvable:$true] %s478_s13 }
  0x37   : > { %p2733_p8 = pnand %p2142_p6, %p49_p2  ;;  %s467_s3 = scalar_lea.sflag [#allocation3], %s466_s30 }
  0x38   : > { %s2411_s5 = sshra.s32 %s477_s7, 4  ;;  %s2418_s1 = scalar_lea.hbm %s2930_s0, 16  ;;  %s2412_s5 = int_to_ptr.hbm [resolvable:$true] %s2411_s5 }
  0x39   : > { %s2413_s9 = scalar_lea.hbm %s2412_s5, 8  ;;  %p2415_p9 = pneg %p2733_p8 }
  0x3a   : > { %p2414_p7 = scmp.ne.s32.totalorder %s2412_s5, %s2413_s9  ;;  %p2419_p0 = scmp.lt.s32.totalorder %s2412_s5, %s2930_s0 }
  0x3b   : > { %p2420_p2 = scmp.lt.s32.totalorder %s2418_s1, %s2413_s9 }
  0x3c   : > { %p2416_p10 = pnand %p2415_p9, %p2414_p7 }
  0x3d   : > { %p2421_p6 = por %p2420_p2, %p2419_p0 }
  0x3e   : > { %p2417_p11 = pneg %p2416_p10 }
  0x40   : > { %p2422_p5 = pnand %p2421_p6, %p2417_p11 }
  0x42   : > { %2425 = shalt.err (!%p2422_p5)
}
  0x43   : > { %s2966_s30 = smov 4   ;;  %s2967_s20 = smov 64  }
  0x44   : > { %2130 = dma.hbm_to_vmem [thread:$0]  (!%p2733_p8), %s477_s7, 128, %s479_s13, %s467_s3, %s2967_s20, %s2967_s20, %s2966_s30  }
  0x45   : > { %490 = sbr.rel (%p2637_p3) target bundleno = 1001 (0x3e9), region = 72  ;;  %s2753_s17 = sand.u32 (!%p2637_p3), 1, %s2515_s26  }
  0x46   : > { %s1703_s5 = sshll.u32 (!%p2637_p3), %s2753_s17, 3  ;;  %s493_s9 = scalar_lea.sflag (!%p2637_p3), [#allocation3], %s2753_s17 }
  0x47   : > { %s2759_s21 = scalar_lea.vmem (!%p2637_p3), [#allocation2], %s1703_s5 }
  0x4a   : > { %2486 = dma.done.wait (%p2715_p12), %s493_s9, 128  }
  0x4b   : > { %2488 = vsyncadd (%p2715_p12), %s493_s9, 4294967168 }
  0x4c   : > { %2490 = dma.done.wait (%p54_p1), [#allocation6], 2304  }
  0x4d   : > { %2492 = vsyncadd (%p54_p1), [#allocation6], 4294964992 }
  0x4e   : > { %2494 = dma.done.wait (%p54_p1), [#allocation9], 1552  }
  0x4f   : > { %2496 = vsyncadd (%p54_p1), [#allocation9], 4294965744 }
  0x50   : > { %2498 = dma.done.wait (%p54_p1), [#allocation12], 2560  }
  0x51   : > { %2500 = vsyncadd (%p54_p1), [#allocation12], 4294964736 }
  0x52   : > { %2502 = dma.done.wait (%p54_p1), [#allocation15], 2048  }
  0x53   : > { %2504 = vsyncadd (%p54_p1), [#allocation15], 4294965248  ;;  %v582_v0 = vlaneseq  ;;  %v2004_v3 = vld [vmem:[#allocation5 + $0x18] sm:$0xff]  ;;  %v2002_v4 = vld [vmem:[#allocation5 + $0x8] sm:$0xff]  ;;  %vm662_vm6 = vcmask 261120   ;;  %vm809_vm7 = vcmask 523264  }
  0x54   : > { %v2006_v5 = vld [vmem:[#allocation5 + $0x28] sm:$0xff]  ;;  %v2003_v8 = vld [vmem:[#allocation5 + $0x10] sm:$0xff]  ;;  %v2001_v9 = vld [vmem:[#allocation5] sm:$0xff]  ;;  %672 = vmatpush.bf16.msra.mxu0 %v2004_v3  ;;  %701 = vmatpush.bf16.msra.mxu1 %v2002_v4  ;;  %s2067_s20 = sshll.u32 %s2632_s15, 3  ;;  %s2976_s3 = sld [smem:[#allocation29_spill]] }
  0x55   : > { %v2781_v1 = vshrl.u32 %v582_v0, 7  ;;  %v2005_v10 = vld [vmem:[#allocation5 + $0x20] sm:$0xff]  ;;  %v578_v11 = vld [vmem:[%s2759_s21] sm:$0xff]   ;;  %736 = vmatpush.bf16.msra.mxu2 %v2006_v5  ;;  %v2014_v33 = vld [vmem:[#allocation7 + $0x38] sm:$0xff]  ;;  %s574_s16 = scalar_lea.vmem [#allocation16], %s1703_s5  ;;  %s1534_s15 = scalar_lea.sflag [#allocation4], %s2753_s17 }
  0x56   : > { %v580_v12 = vunpack.c.l.bf16 %v578_v11  ;;  %v581_v13 = vunpack.c.h.bf16 %v578_v11  ;;  %v2000_v18 = vld [vmem:[%s2759_s21] sm:$0xff]  ;;  %v2013_v34 = vld [vmem:[#allocation7 + $0x30] sm:$0xff]  ;;  %v2018_v35 = vld [vmem:[#allocation7 + $0x58] sm:$0xff]  ;;  %s1546_s22 = sshll.u32 %s574_s16, 4  ;;  %s1547_s22 = int_to_ptr.vmem [resolvable:$true] %s1546_s22 }
  0x57   : > { %v584_v2 = vadd.s32 8, %v2781_v1  ;;  %v589_v6 = vand.u32 7, %v2781_v1  ;;  %vm615_vm0 = vcmp.lt.s32.totalorder %v2781_v1, 1  ;;  %vm626_vm1 = vcmp.lt.s32.totalorder %v2781_v1, 7  ;;  %v2012_v36 = vld [vmem:[#allocation7 + $0x28] sm:$0xff]  ;;  %v2017_v37 = vld [vmem:[#allocation7 + $0x50] sm:$0xff] }
  0x58   : > { %v613_v19 = vrot.slane %v580_v12, 7  ;;  %v614_v20 = vrot.slane %v581_v13, 7  ;;  %v624_v21 = vrot.slane %v580_v12, 1  ;;  %v625_v22 = vrot.slane %v581_v13, 1  ;;  %673 = vmatpush.bf16.msra.mxu0 %v2003_v8  ;;  %702 = vmatpush.bf16.msra.mxu1 %v2001_v9  ;;  %v2011_v38 = vld [vmem:[#allocation7 + $0x20] sm:$0xff]  ;;  %v2016_v39 = vld [vmem:[#allocation7 + $0x48] sm:$0xff] }
  0x59   : > { %v596_v7 = vand.u32 7, %v584_v2  ;;  %vm2788_vm2 = vcmp.eq.s32.totalorder %v589_v6, 0  ;;  %vm2796_vm4 = vcmp.eq.s32.totalorder %v589_v6, 7  ;;  %737 = vmatpush.bf16.msra.mxu2 %v2005_v10  ;;  %v2010_v40 = vld [vmem:[#allocation7 + $0x18] sm:$0xff]  ;;  %v2015_v41 = vld [vmem:[#allocation7 + $0x40] sm:$0xff]  ;;  %v2009_v42 = vld [vmem:[#allocation7 + $0x10] sm:$0xff] }
  0x5a   : > { %v616_v23 = vsel %vm615_vm0, %v613_v19, %v614_v20  ;;  %v617_v24 = vsel %vm615_vm0, %v614_v20, %v613_v19  ;;  %v627_v25 = vsel %vm626_vm1, %v624_v21, %v625_v22  ;;  %v628_v26 = vsel %vm626_vm1, %v625_v22, %v624_v21  ;;  %v2008_v43 = vld [vmem:[#allocation7 + $0x8] sm:$0xff]  ;;  %v2007_v46 = vld [vmem:[#allocation7] sm:$0xff]  ;;  %v2025_v13 = vld [vmem:[#allocation10 + $0x30] sm:$0xff]  ;;  %s1545_s13 = scalar_lea.hbm %s2976_s3, %s2067_s20  ;;  %s2461_s19 = scalar_lea.hbm %s2976_s3, 16 }
  0x5b   : > { %vm2792_vm3 = vcmp.eq.s32.totalorder %v596_v7, 0  ;;  %vm2800_vm5 = vcmp.eq.s32.totalorder %v596_v7, 7  ;;  %v622_v27 = vsel %vm2788_vm2, 0.0, %v617_v24  ;;  %v633_v29 = vsel %vm2796_vm4, 0.0, %v627_v25  ;;  %1724 = vmatmul.msk.bf16.vlgmr.msra.gmra.mxu0 %vm662_vm6, %v2000_v18  ;;  %v2196_v50 = vld [vmem:[%s2932_s2] ss:$0 sm:$0xff] }
  0x5c   : > { %v623_v28 = vsel %vm2792_vm3, 0.0, %v616_v23  ;;  %v634_v30 = vsel %vm2800_vm5, 0.0, %v628_v26  ;;  %817 = vmatpush.bf16.msrb.mxu0 %v2014_v33  ;;  %909 = vmatpush.bf16.msrb.mxu1 %v2018_v35  ;;  %v2026_v12 = vld [vmem:[#allocation10 + $0x38] sm:$0xff]  ;;  %v2024_v20 = vld [vmem:[#allocation10 + $0x28] sm:$0xff]  ;;  %v2021_v21 = vld [vmem:[#allocation10 + $0x10] sm:$0xff]  ;;  %s1548_s7 = sshll.u32 %s1545_s13, 4  ;;  %s1549_s7 = int_to_ptr.hbm [resolvable:$true] %s1548_s7 }
  0x5d   : > { %v635_v31 = vpack.c.bf16 %v623_v28, %v622_v27  ;;  %v709_v32 = vpack.c.bf16 %v634_v30, %v633_v29  ;;  %991 = vmatpush.bf16.msrb.mxu2 %v2026_v12  ;;  %v2022_v18 = vld [vmem:[#allocation10 + $0x18] sm:$0xff]  ;;  %v2029_v22 = vld [vmem:[#allocation10 + $0x50] sm:$0xff]  ;;  %v2023_v23 = vld [vmem:[#allocation10 + $0x20] sm:$0xff]  ;;  %s2455_s23 = sshra.s32 %s1549_s7, 4  ;;  %s2456_s23 = int_to_ptr.hbm [resolvable:$true] %s2455_s23 }
  0x5e   : > { %v2030_v19 = vld [vmem:[#allocation10 + $0x58] sm:$0xff]  ;;  %1032 = vmatpush.bf16.msra.mxu3 %v2022_v18  ;;  %v2020_v24 = vld [vmem:[#allocation10 + $0x8] sm:$0xff]  ;;  %v2019_v27 = vld [vmem:[#allocation10] sm:$0xff]  ;;  %s2457_s1 = scalar_lea.hbm %s2456_s23, 8  ;;  %p2462_p12 = scmp.lt.s32.totalorder %s2456_s23, %s2976_s3 }
  0x5f   : > { %1733 = vmatmul.msk.bf16.vlgmr.msra.gmra.mxu1 %vm662_vm6, %v635_v31  ;;  %1742 = vmatmul.msk.bf16.vlgmr.msra.gmra.mxu2 %vm662_vm6, %v709_v32  ;;  %v2028_v25 = vld [vmem:[#allocation10 + $0x48] sm:$0xff]  ;;  %v2027_v28 = vld [vmem:[#allocation10 + $0x40] sm:$0xff]  ;;  %v2198_v12 = vld [vmem:[%s2936_s6] ss:$0 sm:$0xff]  ;;  %p2458_p1 = scmp.ne.s32.totalorder %s2456_s23, %s2457_s1  ;;  %p2463_p8 = scmp.lt.s32.totalorder %s2461_s19, %s2457_s1 }
  0x60   : > { %818 = vmatpush.bf16.msrb.mxu0 %v2013_v34  ;;  %910 = vmatpush.bf16.msrb.mxu1 %v2017_v37  ;;  %v2197_v34 = vld [vmem:[#allocation8] ss:$0 sm:$0xff]  ;;  %v1922_v1 = vld [vmem:[#allocation13 + $0x30] sm:$0xf]  ;;  %v1914_v15 = vld [vmem:[#allocation13 + $0x20] sm:$0xf] }
  0x61   : > { %992 = vmatpush.bf16.msrb.mxu2 %v2025_v13  ;;  %v2048_v16 = vld [vmem:[#allocation13 + $0x24] sm:$0xf0]  ;;  %v1916_v17 = vld [vmem:[#allocation13 + $0x28] sm:$0xf0]  ;;  %p2459_p3 = pnand %p2458_p1, %p2719_p13  ;;  %p2464_p7 = por %p2463_p8, %p2462_p12 }
  0x62   : > { %1033 = vmatpush.bf16.msra.mxu3 %v2021_v21 }
  0x63   : > { %p2460_p5 = pneg %p2459_p3 }
  0x64   : > { %819 = vmatpush.bf16.msrb.mxu0 %v2012_v36  ;;  %911 = vmatpush.bf16.msrb.mxu1 %v2016_v39 }
  0x65   : > { %993 = vmatpush.bf16.msrb.mxu2 %v2024_v20  ;;  %p2465_p9 = pnand %p2464_p7, %p2460_p5 }
  0x66   : > { %1034 = vmatpush.bf16.msra.mxu3 %v2020_v24 }
  0x68   : > { %820 = vmatpush.bf16.msrb.mxu0 %v2011_v38  ;;  %912 = vmatpush.bf16.msrb.mxu1 %v2015_v41 }
  0x69   : > { %994 = vmatpush.bf16.msrb.mxu2 %v2023_v23 }
  0x6a   : > { %1035 = vmatpush.bf16.msra.mxu3 %v2019_v27 }
  0x6c   : > { %858 = vmatpush.bf16.msra.mxu0 %v2010_v40 }
  0x70   : > { %859 = vmatpush.bf16.msra.mxu0 %v2009_v42 }
  0x74   : > { %860 = vmatpush.bf16.msra.mxu0 %v2008_v43 }
  0x78   : > { %861 = vmatpush.bf16.msra.mxu0 %v2007_v46 }
  0xd8   : > { %v675_v44 = vpop.f32.mrf.mxu0 }
  0xdc   : > { %v704_v45 = vpop.f32.mrf.mxu1 }
  0xdd   : > { %v705_v47 = vadd.f32 %v704_v45, %v675_v44 }
  0xe0   : > { %v677_v51 = vpop.f32.mrf.mxu0 }
  0xe2   : > { %v739_v48 = vpop.f32.mrf.mxu2 }
  0xe3   : > { %v744_v49 = vadd.f32 %v739_v48, %v705_v47 }
  0xe4   : > { %v706_v52 = vpop.f32.mrf.mxu1 }
  0xe5   : > { %v750_v53 = vadd.f32 %v2196_v50, %v744_v49  ;;  %v707_v54 = vadd.f32 %v706_v52, %v677_v51 }
  0xe7   : > { %v752_v57 = vmax.f32 %v750_v53, 0.0 }
  0xe9   : > { %v760_v60 = vrot.slane %v752_v57, 1  ;;  %v754_v6 = vrot.slane %v752_v57, 7 }
  0xea   : > { %v741_v55 = vpop.f32.mrf.mxu2 }
  0xeb   : > { %v745_v56 = vadd.f32 %v741_v55, %v707_v54 }
  0xed   : > { %v751_v58 = vadd.f32 %v2196_v50, %v745_v56 }
  0xef   : > { %v753_v59 = vmax.f32 %v751_v58, 0.0  ;;  %v2038_v58 = vld [vmem:[#allocation11 + $0x38] sm:$0xff] }
  0xf0   : > { %1165 = vmatpush.bf16.msra.mxu1 %v2038_v58  ;;  %v1900_v58 = vld [vmem:[#allocation13 + $0x8] sm:$0xf0] }
  0xf1   : > { %v761_v61 = vrot.slane %v753_v59, 1  ;;  %v775_v62 = vpack.c.bf16 %v753_v59, %v752_v57  ;;  %v755_v5 = vrot.slane %v753_v59, 7  ;;  %v2034_v59 = vld [vmem:[#allocation11 + $0x18] sm:$0xff] }
  0xf2   : > { %1206 = vmatpush.bf16.msra.mxu2 %v2034_v59 }
  0xf3   : > { %1759 = vmatmul.msk.bf16.vlgmr.msrb.gmra.mxu0 %vm809_vm7, %v775_v62  ;;  %v762_v63 = vsel %vm626_vm1, %v760_v60, %v761_v61  ;;  %v763_v0 = vsel %vm626_vm1, %v761_v61, %v760_v60  ;;  %v756_v7 = vsel %vm615_vm0, %v754_v6, %v755_v5  ;;  %v757_v8 = vsel %vm615_vm0, %v755_v5, %v754_v6  ;;  %v2037_v60 = vld [vmem:[#allocation11 + $0x30] sm:$0xff]  ;;  %v2042_v61 = vld [vmem:[#allocation11 + $0x58] sm:$0xff]  ;;  %v2031_v5 = vld [vmem:[#allocation11] sm:$0xff] }
  0xf4   : > { %v764_v2 = vsel %vm2796_vm4, 0.0, %v762_v63  ;;  %v765_v3 = vsel %vm2800_vm5, 0.0, %v763_v0  ;;  %v758_v9 = vsel %vm2788_vm2, 0.0, %v757_v8  ;;  %v759_v10 = vsel %vm2792_vm3, 0.0, %v756_v7  ;;  %1083 = vmatpush.bf16.msrb.mxu0 %v2030_v19  ;;  %1166 = vmatpush.bf16.msra.mxu1 %v2037_v60  ;;  %v2033_v62 = vld [vmem:[#allocation11 + $0x10] sm:$0xff]  ;;  %v2036_v63 = vld [vmem:[#allocation11 + $0x28] sm:$0xff] }
  0xf5   : > { %v868_v4 = vpack.c.bf16 %v765_v3, %v764_v2  ;;  %v766_v11 = vpack.c.bf16 %v759_v10, %v758_v9  ;;  %1257 = vmatpush.bf16.msrb.mxu3 %v2042_v61  ;;  %v2041_v0 = vld [vmem:[#allocation11 + $0x50] sm:$0xff]  ;;  %v2032_v2 = vld [vmem:[#allocation11 + $0x8] sm:$0xff]  ;;  %v2035_v3 = vld [vmem:[#allocation11 + $0x20] sm:$0xff] }
  0xf6   : > { %1207 = vmatpush.bf16.msra.mxu2 %v2033_v62  ;;  %v2039_v6 = vld [vmem:[#allocation11 + $0x40] sm:$0xff]  ;;  %v2058_v60 = vld [vmem:[#allocation14 + $0x38] sm:$0xff]  ;;  %v2057_v62 = vld [vmem:[#allocation14 + $0x30] sm:$0xff] }
  0xf7   : > { %1793 = vmatmul.msk.bf16.vlgmr.msrb.gmra.mxu1 %vm809_vm7, %v868_v4  ;;  %v2040_v4 = vld [vmem:[#allocation11 + $0x48] sm:$0xff]  ;;  %v2066_v61 = vld [vmem:[#allocation14 + $0x78] sm:$0xff] }
  0xf8   : > { %1084 = vmatpush.bf16.msrb.mxu0 %v2029_v22  ;;  %1167 = vmatpush.bf16.msra.mxu1 %v2036_v63  ;;  %v2065_v63 = vld [vmem:[#allocation14 + $0x70] sm:$0xff] }
  0xf9   : > { %1258 = vmatpush.bf16.msrb.mxu3 %v2041_v0  ;;  %v2056_v0 = vld [vmem:[#allocation14 + $0x28] sm:$0xff] }
  0xfa   : > { %1208 = vmatpush.bf16.msra.mxu2 %v2032_v2  ;;  %v2064_v2 = vld [vmem:[#allocation14 + $0x68] sm:$0xff] }
  0xfc   : > { %1085 = vmatpush.bf16.msrb.mxu0 %v2028_v25  ;;  %1168 = vmatpush.bf16.msra.mxu1 %v2035_v3  ;;  %v2055_v3 = vld [vmem:[#allocation14 + $0x20] sm:$0xff] }
  0xfd   : > { %1259 = vmatpush.bf16.msrb.mxu3 %v2040_v4  ;;  %v2063_v4 = vld [vmem:[#allocation14 + $0x60] sm:$0xff] }
  0xfe   : > { %1209 = vmatpush.bf16.msra.mxu2 %v2031_v5 }
 0x100   : > { %1086 = vmatpush.bf16.msrb.mxu0 %v2027_v28 }
 0x101   : > { %1260 = vmatpush.bf16.msrb.mxu3 %v2039_v6 }
 0x103   : > { %1776 = vmatmul.msk.bf16.vlgmr.msra.gmra.mxu0 %vm809_vm7, %v766_v11 }
 0x170   : > { %v822_v26 = vpop.f32.mrf.mxu0 }
 0x174   : > { %v914_v30 = vpop.f32.mrf.mxu1 }
 0x178   : > { %v824_v29 = vpop.f32.mrf.mxu0 }
 0x17c   : > { %v916_v38 = vpop.f32.mrf.mxu1 }
 0x180   : > { %v863_v31 = vpop.f32.mrf.mxu0 }
 0x181   : > { %v864_v32 = vadd.f32 %v863_v31, %v822_v26 }
 0x183   : > { %v919_v33 = vadd.f32 %v914_v30, %v864_v32 }
 0x185   : > { %v925_v35 = vadd.f32 %v2197_v34, %v919_v33 }
 0x187   : > { %v927_v40 = vmax.f32 %v925_v35, 0.0 }
 0x188   : > { %v865_v36 = vpop.f32.mrf.mxu0 }
 0x189   : > { %v866_v37 = vadd.f32 %v865_v36, %v824_v29  ;;  %v929_v43 = vrot.slane %v927_v40, 7  ;;  %v935_v44 = vrot.slane %v927_v40, 1 }
 0x18b   : > { %v920_v39 = vadd.f32 %v916_v38, %v866_v37 }
 0x18d   : > { %v926_v41 = vadd.f32 %v2197_v34, %v920_v39 }
 0x18f   : > { %v928_v42 = vmax.f32 %v926_v41, 0.0  ;;  %v2050_v41 = vld [vmem:[#allocation13 + $0x34] sm:$0xf0] }
 0x190   : > { %v1923_v14 = vor.u32 %v2050_v41, %v1922_v1 }
 0x191   : > { %v930_v45 = vrot.slane %v928_v42, 7  ;;  %v936_v46 = vrot.slane %v928_v42, 1  ;;  %v950_v47 = vpack.c.bf16 %v928_v42, %v927_v40  ;;  %v2049_v42 = vld [vmem:[#allocation13 + $0x34] sm:$0xf] }
 0x192   : > { %1339 = vmatpush.bf16.msra.mxu0 %v1923_v14 }
 0x193   : > { %1810 = vmatmul.msk.bf16.vlgmr.msrb.gmra.mxu2 %vm809_vm7, %v950_v47  ;;  %v931_v48 = vsel %vm615_vm0, %v929_v43, %v930_v45  ;;  %v932_v49 = vsel %vm615_vm0, %v930_v45, %v929_v43  ;;  %v937_v50 = vsel %vm626_vm1, %v935_v44, %v936_v46  ;;  %v938_v51 = vsel %vm626_vm1, %v936_v46, %v935_v44  ;;  %v1924_v43 = vld [vmem:[#allocation13 + $0x38] sm:$0xf0]  ;;  %v2047_v45 = vld [vmem:[#allocation13 + $0x24] sm:$0xf] }
 0x194   : > { %v933_v52 = vsel %vm2788_vm2, 0.0, %v932_v49  ;;  %v934_v53 = vsel %vm2792_vm3, 0.0, %v931_v48  ;;  %v939_v54 = vsel %vm2796_vm4, 0.0, %v937_v50  ;;  %v940_v55 = vsel %vm2800_vm5, 0.0, %v938_v51  ;;  %v1906_v48 = vld [vmem:[#allocation13 + $0x10] sm:$0xf]  ;;  %1501 = vmatpush.bf16.msrb.mxu2 %v2058_v60 }
 0x195   : > { %v941_v56 = vpack.c.bf16 %v934_v53, %v933_v52  ;;  %v1042_v57 = vpack.c.bf16 %v940_v55, %v939_v54  ;;  %v1927_v44 = vor.u32 %v2049_v42, %v1924_v43  ;;  %v1915_v46 = vor.u32 %v2048_v16, %v1914_v15  ;;  %v2046_v49 = vld [vmem:[#allocation13 + $0x14] sm:$0xf0]  ;;  %v2045_v50 = vld [vmem:[#allocation13 + $0x14] sm:$0xf]  ;;  %v1908_v52 = vld [vmem:[#allocation13 + $0x18] sm:$0xf0] }
 0x196   : > { %v1919_v47 = vor.u32 %v2047_v45, %v1916_v17  ;;  %v1907_v51 = vor.u32 %v2046_v49, %v1906_v48  ;;  %v1911_v53 = vor.u32 %v2045_v50, %v1908_v52  ;;  %v1898_v54 = vld [vmem:[#allocation13] sm:$0xf]  ;;  %v2044_v55 = vld [vmem:[#allocation13 + $0x4] sm:$0xf0] }
 0x197   : > { %1827 = vmatmul.msk.bf16.vlgmr.msra.gmra.mxu3 %vm809_vm7, %v941_v56  ;;  %1844 = vmatmul.msk.bf16.vlgmr.msrb.gmra.mxu0 %vm809_vm7, %v1042_v57  ;;  %v2043_v56 = vld [vmem:[#allocation13 + $0x4] sm:$0xf]  ;;  %v1899_v57 = vor.u32 %v2044_v55, %v1898_v54 }
 0x198   : > { %1353 = vmatpush.bf16.msrb.mxu1 %v1927_v44  ;;  %1340 = vmatpush.bf16.msra.mxu0 %v1915_v46  ;;  %v1903_v59 = vor.u32 %v2043_v56, %v1900_v58 }
 0x199   : > { %1515 = vmatpush.bf16.msra.mxu3 %v2066_v61  ;;  %1502 = vmatpush.bf16.msrb.mxu2 %v2057_v62 }
 0x19c   : > { %1354 = vmatpush.bf16.msrb.mxu1 %v1919_v47  ;;  %1341 = vmatpush.bf16.msra.mxu0 %v1907_v51  ;;  %v2200_v47 = vld [vmem:[%s2942_s12] ss:$0 sm:$0xff] }
 0x19d   : > { %1516 = vmatpush.bf16.msra.mxu3 %v2065_v63  ;;  %1503 = vmatpush.bf16.msrb.mxu2 %v2056_v0 }
 0x1a0   : > { %1355 = vmatpush.bf16.msrb.mxu1 %v1911_v53  ;;  %1342 = vmatpush.bf16.msra.mxu0 %v1899_v57 }
 0x1a1   : > { %1517 = vmatpush.bf16.msra.mxu3 %v2064_v2  ;;  %1504 = vmatpush.bf16.msrb.mxu2 %v2055_v3 }
 0x1a4   : > { %1356 = vmatpush.bf16.msrb.mxu1 %v1903_v59 }
 0x1a5   : > { %1518 = vmatpush.bf16.msra.mxu3 %v2063_v4 }
 0x214   : > { %v1088_v8 = vpop.f32.mrf.mxu0 }
 0x216   : > { %v996_v7 = vpop.f32.mrf.mxu2 }
 0x21a   : > { %v1037_v9 = vpop.f32.mrf.mxu3 }
 0x21b   : > { %v1038_v10 = vadd.f32 %v1037_v9, %v996_v7 }
 0x21c   : > { %v1090_v21 = vpop.f32.mrf.mxu0 }
 0x21d   : > { %v1093_v11 = vadd.f32 %v1088_v8, %v1038_v10  ;;  %v2199_v10 = vld [vmem:[%s2938_s8] ss:$0 sm:$0xff] }
 0x21e   : > { %v998_v18 = vpop.f32.mrf.mxu2 }
 0x21f   : > { %v1099_v13 = vadd.f32 %v2198_v12, %v1093_v11 }
 0x221   : > { %v1101_v23 = vmax.f32 %v1099_v13, 0.0 }
 0x222   : > { %v1039_v19 = vpop.f32.mrf.mxu3 }
 0x223   : > { %v1040_v20 = vadd.f32 %v1039_v19, %v998_v18  ;;  %v1103_v26 = vrot.slane %v1101_v23, 7  ;;  %v1109_v27 = vrot.slane %v1101_v23, 1 }
 0x225   : > { %v1094_v22 = vadd.f32 %v1090_v21, %v1040_v20 }
 0x227   : > { %v1100_v24 = vadd.f32 %v2198_v12, %v1094_v22 }
 0x229   : > { %v1102_v25 = vmax.f32 %v1100_v24, 0.0 }
 0x22b   : > { %v1104_v28 = vrot.slane %v1102_v25, 7  ;;  %v1110_v29 = vrot.slane %v1102_v25, 1  ;;  %v1124_v30 = vpack.c.bf16 %v1102_v25, %v1101_v23  ;;  %v2054_v25 = vld [vmem:[#allocation14 + $0x18] sm:$0xff] }
 0x22c   : > { %1505 = vmatpush.bf16.msrb.mxu2 %v2054_v25 }
 0x22d   : > { %1861 = vmatmul.msk.bf16.vlgmr.msra.gmra.mxu1 %vm809_vm7, %v1124_v30  ;;  %v1105_v31 = vsel %vm615_vm0, %v1103_v26, %v1104_v28  ;;  %v1106_v32 = vsel %vm615_vm0, %v1104_v28, %v1103_v26  ;;  %v1111_v33 = vsel %vm626_vm1, %v1109_v27, %v1110_v29  ;;  %v1112_v34 = vsel %vm626_vm1, %v1110_v29, %v1109_v27  ;;  %v2062_v26 = vld [vmem:[#allocation14 + $0x58] sm:$0xff]  ;;  %v2053_v27 = vld [vmem:[#allocation14 + $0x10] sm:$0xff]  ;;  %v2052_v29 = vld [vmem:[#allocation14 + $0x8] sm:$0xff] }
 0x22e   : > { %v1107_v35 = vsel %vm2788_vm2, 0.0, %v1106_v32  ;;  %v1108_v36 = vsel %vm2792_vm3, 0.0, %v1105_v31  ;;  %v1113_v37 = vsel %vm2796_vm4, 0.0, %v1111_v33  ;;  %v1114_v38 = vsel %vm2800_vm5, 0.0, %v1112_v34  ;;  %1519 = vmatpush.bf16.msra.mxu3 %v2062_v26  ;;  %v2061_v28 = vld [vmem:[#allocation14 + $0x50] sm:$0xff]  ;;  %v2060_v30 = vld [vmem:[#allocation14 + $0x48] sm:$0xff] }
 0x22f   : > { %v1115_v39 = vpack.c.bf16 %v1108_v36, %v1107_v35  ;;  %v1216_v40 = vpack.c.bf16 %v1114_v38, %v1113_v37  ;;  %v2051_v31 = vld [vmem:[#allocation14] sm:$0xff]  ;;  %v1286_v33 = vld [vmem:[%s2940_s10] sm:$0x3] }
 0x230   : > { %1506 = vmatpush.bf16.msrb.mxu2 %v2053_v27  ;;  %v2059_v32 = vld [vmem:[#allocation14 + $0x40] sm:$0xff]  ;;  %v1288_v36 = vperm.slane %v1286_v33, 0  ;;  %v1289_v37 = vperm.slane %v1286_v33, 1 }
 0x231   : > { %1878 = vmatmul.msk.bf16.vlgmr.msra.gmra.mxu2 %vm809_vm7, %v1115_v39  ;;  %1895 = vmatmul.msk.bf16.vlgmr.msrb.gmra.mxu3 %vm809_vm7, %v1216_v40 }
 0x232   : > { %1520 = vmatpush.bf16.msra.mxu3 %v2061_v28 }
 0x234   : > { %1507 = vmatpush.bf16.msrb.mxu2 %v2052_v29 }
 0x236   : > { %1521 = vmatpush.bf16.msra.mxu3 %v2060_v30 }
 0x238   : > { %1508 = vmatpush.bf16.msrb.mxu2 %v2051_v31 }
 0x23a   : > { %1522 = vmatpush.bf16.msra.mxu3 %v2059_v32 }
 0x2aa   : > { %v1170_v5 = vpop.f32.mrf.mxu1 }
 0x2b2   : > { %v1172_v11 = vpop.f32.mrf.mxu1 }
 0x2b4   : > { %v1211_v6 = vpop.f32.mrf.mxu2  ;;  %v1262_v7 = vpop.f32.mrf.mxu3 }
 0x2b5   : > { %v1212_v8 = vadd.f32 %v1211_v6, %v1170_v5 }
 0x2b7   : > { %v1267_v9 = vadd.f32 %v1262_v7, %v1212_v8 }
 0x2b9   : > { %v1273_v19 = vadd.f32 %v2199_v10, %v1267_v9 }
 0x2bb   : > { %v1275_v22 = vmax.f32 %v1273_v19, 0.0 }
 0x2bc   : > { %v1213_v12 = vpop.f32.mrf.mxu2  ;;  %v1264_v18 = vpop.f32.mrf.mxu3 }
 0x2bd   : > { %v1214_v13 = vadd.f32 %v1213_v12, %v1172_v11 }
 0x2bf   : > { %v1268_v20 = vadd.f32 %v1264_v18, %v1214_v13 }
 0x2c1   : > { %v1274_v21 = vadd.f32 %v2199_v10, %v1268_v20 }
 0x2c3   : > { %v1276_v23 = vmax.f32 %v1274_v21, 0.0 }
 0x2c5   : > { %v1277_v24 = vpack.c.bf16 %v1276_v23, %v1275_v22 }
 0x2c7   : > { %1928 = vmatmul.msk.bf16.vlgmr.msra.gmra.mxu0 %vm809_vm7, %v1277_v24  ;;  %1929 = vmatmul.msk.bf16.vlgmr.msrb.gmra.mxu1 %vm809_vm7, %v1277_v24 }
 0x344   : > { %v1344_v34 = vpop.f32.mrf.mxu0  ;;  %v1358_v35 = vpop.f32.mrf.mxu1 }
 0x345   : > { %v1345_v38 = vadd.f32 %v1344_v34, %v1288_v36  ;;  %v1359_v39 = vadd.f32 %v1358_v35, %v1289_v37 }
 0x347   : > { %v1363_v14 = vmax.f32 %v1345_v38, 0.0  ;;  %v1364_v43 = vmax.f32 %v1359_v39, 0.0 }
 0x34c   : > { %v1346_v40 = vpop.f32.mrf.mxu0  ;;  %v1360_v1 = vpop.f32.mrf.mxu1 }
 0x34d   : > { %v1347_v41 = vadd.f32 %v1346_v40, %v1288_v36  ;;  %v1361_v42 = vadd.f32 %v1360_v1, %v1289_v37 }
 0x34f   : > { %v1365_v44 = vmax.f32 %v1347_v41, 0.0  ;;  %v1366_v15 = vmax.f32 %v1361_v42, 0.0 }
 0x351   : > { %v1367_v16 = vpack.c.bf16 %v1365_v44, %v1363_v14  ;;  %v1368_v45 = vpack.c.bf16 %v1366_v15, %v1364_v43 }
 0x353   : > { %1509 = vmatmul.bf16.vlgmr.msrb.gmra.mxu2 %v1367_v16  ;;  %1523 = vmatmul.bf16.vlgmr.msra.gmra.mxu3 %v1368_v45 }
 0x3d6   : > { %v1510_v46 = vpop.f32.mrf.mxu2  ;;  %v1524_v17 = vpop.f32.mrf.mxu3 }
 0x3d7   : > { %v1511_v48 = vadd.f32 %v2200_v47, %v1510_v46 }
 0x3d9   : > { %v1525_v52 = vadd.f32 %v1524_v17, %v1511_v48 }
 0x3de   : > { %v1512_v49 = vpop.f32.mrf.mxu2  ;;  %v1526_v51 = vpop.f32.mrf.mxu3 }
 0x3df   : > { %v1513_v50 = vadd.f32 %v2200_v47, %v1512_v49 }
 0x3e1   : > { %v1527_v53 = vadd.f32 %v1526_v51, %v1513_v50 }
 0x3e3   : > { %v2071_v54 = vpack.c.bf16 %v1527_v53, %v1525_v52 }
 0x3e5   : > { %2072 = vst [vmem:[%s574_s16] sm:$0xff] %v2071_v54  }
 0x3e6   : > { %2468 = shalt.err (!%p2465_p9)
}
 0x3e7   : > { %s2536_s17 = smov 64   ;;  %s2537_s9 = smov 4  }
 0x3e8   : > { %2103 = dma.vmem_to_hbm [thread:$0]  (%p2719_p13), %s1547_s22, 128, %s1549_s7, %s1534_s15, %s2536_s17, %s2536_s17, %s2537_s9  }
 0x3e9 PF: > { %s1563_s21 = sand.u32 1, %s2511_s25   ;;  %p2977_p10 = scmp.ge.s32.totalorder %s2523_s28, 2 }
 0x3ea   : > { %s1564_s13 = scalar_lea.sflag [#allocation4], %s1563_s21 }
 0x3eb   : > { %p2132_p11 = pnand %p2977_p10, %p2724_p4 }
 0x3ed   : > { %p2133_p0 = pneg %p2132_p11 }
 0x3ef   : > { %2506 = dma.done.wait (%p2133_p0), %s1564_s13, 128  }
 0x3f0   : > { %2508 = vsyncadd (%p2133_p0), %s1564_s13, 4294967168  ;;  %p30_p2 = scmp.ge.s32.totalorder %s2699_s29, 4   ;;  %s2978_s25 = smov %s2515_s26 }
 0x3f1   : > { %s2979_s26 = smov %s2519_s27  ;;  %s2980_s27 = smov %s2711_s4 }
 0x3f2   : > { %s2981_s28 = smov %s2699_s29  ;;  %32 = sbr.rel (!%p30_p2) target bundleno = 17 (0x11), region = 153 }
 0x3f7   :  { %1570 = vsyncpa [#allocation3], 1 }
 0x3f8   :  { %1572 = vsyncpa [#allocation3 + $0x1], 1 }
 0x3f9   :  { %1573 = vsyncpa [#allocation6], 1 }
 0x3fa   :  { %1574 = vsyncpa [#allocation9], 1 }
 0x3fb   :  { %1575 = vsyncpa [#allocation12], 1 }
 0x3fc   :  { %1576 = vsyncpa [#allocation15], 1 }
 0x3fd   :  { %1577 = vsyncpa [#allocation4], 1 }
 0x3fe   :  { %1579 = vsyncpa [#allocation4 + $0x1], 1 }

</bundles_post_ra>
